<compile_context>
chip_gen: v6e
topology: v6e:2x2x1
jax: 0.10.0
libtpu: 0.0.40
codegen_flags: <defaults>
</compile_context>

<pallas_src>
import jax
import jax.numpy as jnp
from jax.experimental import pallas as pl
from jax.experimental.pallas import tpu as pltpu


def _cast_copy_kernel(x_ref, out_ref):
    # Fused dtype-conversion overwrite: single read of x, single write of the
    # bank tile.  The old bank contents are never read.
    out_ref[...] = x_ref[...].astype(out_ref.dtype)


def memory_base_forward(baseclss_feat, x):
    """Functional equivalent of memory_base.forward / _momentum_update.

    Args:
      baseclss_feat: [n_cls, feat_dim] current memory bank (only its
        shape/dtype matter -- the PyTorch op never reads the old values).
      x:             [n_cls, feat_dim] new class features.
    Returns:
      The new memory bank [n_cls, feat_dim] == x cast to the bank's dtype.
      Callers must rebind (bank = memory_base_forward(bank, x)); for true
      buffer reuse wrap the call in jax.jit(..., donate_argnums=(0,)).
    """
    n_cls, feat_dim = baseclss_feat.shape
    assert x.shape == (n_cls, feat_dim), (x.shape, baseclss_feat.shape)

    # --- Fast path: no dtype conversion needed -> no kernel, no copy. -------
    if x.dtype == baseclss_feat.dtype:
        return x

    # --- Fused-cast path: one VMEM-tiled pallas_call. -----------------------
    # Row block: full array when small (single grid step), otherwise 1024 rows
    # (multiple of 8/16/32 sublanes for f32/bf16/fp8 packing).  The last dim is
    # kept whole so stores stay lane-dense (512 = 4 x 128 -> unmasked vst).
    block_rows = n_cls if n_cls <= 1024 else 1024
    grid = (pl.cdiv(n_cls, block_rows),)

    return pl.pallas_call(
        _cast_copy_kernel,
        out_shape=jax.ShapeDtypeStruct((n_cls, feat_dim), baseclss_feat.dtype),
        grid=grid,
        in_specs=[pl.BlockSpec((block_rows, feat_dim), lambda i: (i, 0))],
        out_specs=pl.BlockSpec((block_rows, feat_dim), lambda i: (i, 0)),
        compiler_params=pltpu.CompilerParams(
            dimension_semantics=("arbitrary",)),
    )(x)


if __name__ == "__main__":
    # Small, deterministic setup consistent with the module: n_cls classnames,
    # CLIP feature dim 512.  CLIP weights are half precision -> bf16 bank on
    # TPU, while incoming features are f32: exercises the fused-cast kernel.
    n_cls, feat_dim = 8, 512
    key = jax.random.PRNGKey(0)

    # Parameter init exactly as in __init__: zeros(n_cls, 512, dtype=clip dtype).
    bank_bf16 = jnp.zeros((n_cls, feat_dim), dtype=jnp.bfloat16)
    x_f32 = jax.random.normal(key, (n_cls, feat_dim), dtype=jnp.float32)

    # Production-style call: jit with the bank donated so its buffer can be
    # reused for the output (callers rebind to the returned array).
    update_bank = jax.jit(memory_base_forward, donate_argnums=(0,))
    new_bank = jax.block_until_ready(update_bank(bank_bf16, x_f32))

    assert new_bank.shape == (n_cls, feat_dim)
    assert new_bank.dtype == jnp.bfloat16
    expected = x_f32.astype(jnp.bfloat16)
    assert bool(jnp.allclose(new_bank.astype(jnp.float32),
                             expected.astype(jnp.float32))), \
        "fused-cast overwrite produced wrong values"

    # Matching-dtype fast path: no kernel launch, new bank is x itself.
    bank_f32 = jnp.zeros((n_cls, feat_dim), dtype=jnp.float32)
    x2 = jax.random.normal(jax.random.PRNGKey(1), (n_cls, feat_dim),
                           dtype=jnp.float32)
    fast = jax.block_until_ready(memory_base_forward(bank_f32, x2))
    assert fast.dtype == jnp.float32
    assert bool(jnp.allclose(fast, x2)), "fast-path overwrite mismatch"

    # TODO(synk): true in-place nn.Parameter mutation has no JAX equivalent;
    # callers must rebind to the returned bank (donation gives buffer reuse).
    print("KERNEL_OK")
</pallas_src>

<mosaic_0001>
module attributes {stable_mosaic.version = 11 : i64} {
  func.func @_cast_copy_kernel(%arg0: i32, %arg1: memref<8x512xf32, #tpu.memory_space<vmem>>, %arg2: memref<8x512xbf16, #tpu.memory_space<vmem>>) attributes {dimension_semantics = [#tpu.dimension_semantics<arbitrary>], iteration_bounds = array<i64: 1>, scalar_prefetch = 0 : i64, scratch_operands = 0 : i64, tpu.core_type = #tpu.core_type<tc>, window_params = [{transform_indices = @transform_0, window_bounds = array<i64: 8, 512>}, {transform_indices = @transform_1, window_bounds = array<i64: 8, 512>}]} {
    %c0 = arith.constant 0 : index
    %c0_0 = arith.constant 0 : index
    %0 = vector.load %arg1[%c0, %c0_0] : memref<8x512xf32, #tpu.memory_space<vmem>>, vector<8x512xf32>
    %1 = arith.truncf %0 : vector<8x512xf32> to vector<8x512xbf16>
    %c0_1 = arith.constant 0 : index
    %c0_2 = arith.constant 0 : index
    %2 = vector.load %arg2[%c0_1, %c0_2] : memref<8x512xbf16, #tpu.memory_space<vmem>>, vector<8x512xbf16>
    tpu.vector_store %arg2[%c0_1, %c0_2], %1 {strides = array<i32>} : memref<8x512xbf16, #tpu.memory_space<vmem>>, vector<8x512xbf16>,
    return
  }
  func.func @transform_0(%arg0: i32) -> (i32, i32) {
    %c0_i32 = arith.constant 0 : i32
    %c0_i32_0 = arith.constant 0 : i32
    return %arg0, %c0_i32 : i32, i32
  }
  func.func @transform_1(%arg0: i32) -> (i32, i32) {
    %c0_i32 = arith.constant 0 : i32
    %c0_i32_0 = arith.constant 0 : i32
    return %arg0, %c0_i32 : i32, i32
  }
}

</mosaic_0001>

<bundles_post_ra>
// kernel: memory_base_forward.1
= control target key start
LH: loop header
LB: loop body
LE: loop exit
PB: predicated region body
PF: predicated region fallthrough
CT: control target
= control target key end

     0   :  { %6 = vsyncpa [#allocation3], 0  ;;  %s126_s0 = inlined_call_operand.hbm [shape: f32[8,512], index: 0, kind: input, shape index: {}]   ;;  %s127_s1 = inlined_call_operand.hbm [shape: bf16[8,512], index: 1, kind: output, shape index: {}]  }
   0x1   :  { %7 = vsyncpa [#allocation4], 0  ;;  %s108_s6 = smov [#allocation2]  }
   0x2   :  { %s14_s7 = sshll.u32 %s108_s6, 4  ;;  %s15_s7 = int_to_ptr.vmem [resolvable:$true] %s14_s7 }
   0x3   :  { %s72_s8 = scalar_lea.vmem %s15_s7, 512  ;;  %p77_p1 = scmp.lt.s32.totalorder %s15_s7, %s15_s7 }
   0x4   :  { %p73_p0 = scmp.ne.s32.totalorder %s15_s7, %s72_s8  ;;  %p78_p2 = scmp.lt.s32.totalorder %s72_s8, %s72_s8 }
   0x6   :  { %p79_p3 = por %p78_p2, %p77_p1 }
   0x8   :  { %p80_p4 = pnand %p79_p3, %p73_p0 }
   0xa   :  { %83 = shalt.err (!%p80_p4)
}
   0xb   :  { %17 = dma.hbm_to_vmem [thread:$0]  %s126_s0, 512, %s15_s7, [#allocation3]  }
   0xc   :  { %104 = dma.done.wait [#allocation3], 512  }
   0xd   :  { %105 = vsyncadd [#allocation3], 4294966784  ;;  %s109_s11 = smov [#allocation5]   ;;  %v21_v0 = vld [vmem:[#allocation2] sm:$0xff]  ;;  %v22_v1 = vld [vmem:[#allocation2 + $0x8] sm:$0xff] }
   0xe   :  { %s49_s12 = sshll.u32 %s109_s11, 4  ;;  %v23_v2 = vld [vmem:[#allocation2 + $0x10] sm:$0xff]  ;;  %v60_v3 = vpack.c.bf16 %v22_v1, %v21_v0  ;;  %v24_v4 = vld [vmem:[#allocation2 + $0x18] sm:$0xff]  ;;  %s50_s12 = int_to_ptr.vmem [resolvable:$true] %s49_s12 }
   0xf   :  { %v61_v5 = vpack.c.bf16 %v24_v4, %v23_v2  ;;  %s84_s13 = scalar_lea.vmem %s50_s12, 256  ;;  %p89_p6 = scmp.lt.s32.totalorder %s50_s12, %s50_s12 }
  0x10   :  { %41 = vst [vmem:[#allocation5] sm:$0xff] %v60_v3  ;;  %p85_p5 = scmp.ne.s32.totalorder %s50_s12, %s84_s13  ;;  %p90_p7 = scmp.lt.s32.totalorder %s84_s13, %s84_s13 }
  0x11   :  { %42 = vst [vmem:[#allocation5 + $0x8] sm:$0xff] %v61_v5 }
  0x12   :  { %p91_p8 = por %p90_p7, %p89_p6 }
  0x14   :  { %p92_p9 = pnand %p91_p8, %p85_p5 }
  0x16   :  { %95 = shalt.err (!%p92_p9)
}
  0x17   :  { %52 = dma.vmem_to_hbm [thread:$0]  %s50_s12, 256, %s127_s1, [#allocation4]  }
  0x18   :  { %106 = dma.done.wait [#allocation4], 256  }
  0x19   :  { %107 = vsyncadd [#allocation4], 4294967040 }
  0x1a   :  { %56 = vsyncpa [#allocation3], 1 }
  0x1b   :  { %57 = vsyncpa [#allocation4], 1 }

</bundles_post_ra>
